<compile_context>
chip_gen: v5e
topology: v5e:2x2
jax: 0.10.0
libtpu: 0.0.40
codegen_flags: <defaults>
</compile_context>

<pallas_src>
import jax
import jax.numpy as jnp
from jax.experimental import pallas as pl
from jax.experimental.pallas import tpu as pltpu


def _max_disc_kernel(fg_ref, fd_ref, w_ref, b_ref, o_ref):
    # ReLU + weight multiply on the VPU (cast to f32 inside the kernel).
    fg = jnp.maximum(fg_ref[...].astype(jnp.float32), 0.0)   # (B, H)
    fd = jnp.maximum(fd_ref[...].astype(jnp.float32), 0.0)   # (B, H)

    w = w_ref[...].astype(jnp.float32)                       # (2, H)
    wg = w[0:1, :]                                            # (1, H) static slice
    wd = w[1:2, :]                                            # (1, H) static slice

    # Single merged lane reduction (one XLU reduce instead of two);
    # algebraically identical to relu(cat(fg, fd)) @ W.T.
    s = jnp.sum(fg * wg + fd * wd, axis=-1, keepdims=True)   # (B, 1)

    o_ref[...] = s + b_ref[0]                                # add scalar bias


def max_discriminator(f_g, f_d, weight, bias):
    """f_g, f_d: (B, H); weight: (1, 2H) (natural PyTorch layout); bias: (1,)."""
    B, H = f_g.shape

    # Free contiguous view: (1, 2H) -> (2, H). One input DMA for both halves,
    # no slice HLOs, and no in-kernel lane-offset slice (which would need the XLU).
    w2 = weight.reshape(2, H)

    return pl.pallas_call(
        _max_disc_kernel,
        out_shape=jax.ShapeDtypeStruct((B, 1), jnp.float32),
        # No grid: whole arrays as single VMEM blocks, bias scalar in SMEM.
        in_specs=[
            pl.BlockSpec(memory_space=pltpu.MemorySpace.VMEM),   # f_g
            pl.BlockSpec(memory_space=pltpu.MemorySpace.VMEM),   # f_d
            pl.BlockSpec(memory_space=pltpu.MemorySpace.VMEM),   # weight (2, H)
            pl.BlockSpec(memory_space=pltpu.MemorySpace.SMEM),   # bias (1,)
        ],
        out_specs=pl.BlockSpec(memory_space=pltpu.MemorySpace.VMEM),
        # Advisory hint: this custom call is trivially cheap.
        cost_estimate=pl.CostEstimate(
            flops=4 * B * H,
            transcendentals=0,
            bytes_accessed=(2 * B * H + 2 * H + B + 1) * 4,
        ),
    )(f_g, f_d, w2, bias.astype(jnp.float32))


if __name__ == "__main__":
    key = jax.random.PRNGKey(0)
    k_fg, k_fd, k_w = jax.random.split(key, 3)

    B = 8          # batch
    hidden_g = 32  # hidden size of generator features
    initrange = 0.1

    # Deterministic parameter init (matches __init__: uniform weight, zero bias).
    weight = jax.random.uniform(
        k_w, (1, 2 * hidden_g), minval=-initrange, maxval=initrange,
        dtype=jnp.float32)
    bias = jnp.zeros((1,), dtype=jnp.float32)

    f_g = jax.random.normal(k_fg, (B, hidden_g), dtype=jnp.float32)
    f_d = jax.random.normal(k_fd, (B, hidden_g), dtype=jnp.float32)

    out = max_discriminator(f_g, f_d, weight, bias)
    out = jax.block_until_ready(out)

    # Reference check in plain JAX (matches the PyTorch forward).
    h_ref = jnp.maximum(jnp.concatenate([f_g, f_d], axis=1), 0.0)
    ref = h_ref @ weight.T + bias
    assert out.shape == (B, 1)
    assert jnp.allclose(out, ref, atol=1e-5, rtol=1e-5)

    print("KERNEL_OK")
</pallas_src>

<mosaic_0001>
module attributes {stable_mosaic.version = 11 : i64} {
  func.func @_max_disc_kernel(%arg0: memref<8x32xf32, #tpu.memory_space<vmem>>, %arg1: memref<8x32xf32, #tpu.memory_space<vmem>>, %arg2: memref<2x32xf32, #tpu.memory_space<vmem>>, %arg3: memref<1xf32, #tpu.memory_space<smem>>, %arg4: memref<8x1xf32, #tpu.memory_space<vmem>>) attributes {dimension_semantics = [], scalar_prefetch = 0 : i64, scratch_operands = 0 : i64, tpu.core_type = #tpu.core_type<tc>} {
    %c0 = arith.constant 0 : index
    %c0_0 = arith.constant 0 : index
    %0 = vector.load %arg0[%c0, %c0_0] : memref<8x32xf32, #tpu.memory_space<vmem>>, vector<8x32xf32>
    %cst = arith.constant 0.000000e+00 : f32
    %1 = vector.broadcast %cst : f32 to vector<8x32xf32>
    %2 = arith.maximumf %0, %1 : vector<8x32xf32>
    %c0_1 = arith.constant 0 : index
    %c0_2 = arith.constant 0 : index
    %3 = vector.load %arg1[%c0_1, %c0_2] : memref<8x32xf32, #tpu.memory_space<vmem>>, vector<8x32xf32>
    %cst_3 = arith.constant 0.000000e+00 : f32
    %4 = vector.broadcast %cst_3 : f32 to vector<8x32xf32>
    %5 = arith.maximumf %3, %4 : vector<8x32xf32>
    %c0_4 = arith.constant 0 : index
    %c0_5 = arith.constant 0 : index
    %6 = vector.load %arg2[%c0_4, %c0_5] : memref<2x32xf32, #tpu.memory_space<vmem>>, vector<2x32xf32>
    %7 = vector.extract_strided_slice %6 {offsets = [0, 0], sizes = [1, 32], strides = [1, 1]} : vector<2x32xf32> to vector<1x32xf32>
    %8 = vector.extract_strided_slice %6 {offsets = [1, 0], sizes = [1, 32], strides = [1, 1]} : vector<2x32xf32> to vector<1x32xf32>
    %9 = vector.broadcast %7 : vector<1x32xf32> to vector<8x32xf32>
    %10 = arith.mulf %2, %9 : vector<8x32xf32>
    %11 = vector.broadcast %8 : vector<1x32xf32> to vector<8x32xf32>
    %12 = arith.mulf %5, %11 : vector<8x32xf32>
    %13 = arith.addf %10, %12 : vector<8x32xf32>
    %cst_6 = arith.constant dense<0.000000e+00> : vector<8xf32>
    %14 = vector.multi_reduction <add>, %13, %cst_6 [1] : vector<8x32xf32> to vector<8xf32>
    %15 = vector.shape_cast %14 : vector<8xf32> to vector<8x1xf32>
    %c0_7 = arith.constant 0 : index
    %16 = memref.load %arg3[%c0_7] : memref<1xf32, #tpu.memory_space<smem>>
    %17 = vector.broadcast %16 : f32 to vector<8x1xf32>
    %18 = arith.addf %15, %17 : vector<8x1xf32>
    %c0_8 = arith.constant 0 : index
    %c0_9 = arith.constant 0 : index
    %19 = vector.load %arg4[%c0_8, %c0_9] : memref<8x1xf32, #tpu.memory_space<vmem>>, vector<8x1xf32>
    tpu.vector_store %arg4[%c0_8, %c0_9], %18 {strides = array<i32>} : memref<8x1xf32, #tpu.memory_space<vmem>>, vector<8x1xf32>,
    return
  }
}

</mosaic_0001>

<bundles_post_ra>
// kernel: tpu_custom_call.1
= control target key start
LH: loop header
LB: loop body
LE: loop exit
PB: predicated region body
PF: predicated region fallthrough
CT: control target
= control target key end

     0   :  { %10 = vsyncpa [#allocation4], 0  ;;  %s167_s0 = inlined_call_operand.hbm [shape: f32[8,32], index: 0, kind: input, shape index: {}]   ;;  %s168_s1 = inlined_call_operand.hbm [shape: f32[8,32], index: 1, kind: input, shape index: {}]   ;;  %s169_s2 = inlined_call_operand.vmem [shape: f32[2,32], index: 2, kind: input, shape index: {}]   ;;  %s170_s3 = inlined_call_operand.<no memory space> [shape: f32[1], index: 3, kind: input, shape index: {}]   ;;  %s171_s4 = inlined_call_operand.vmem [shape: f32[8,1], index: 4, kind: output, shape index: {}]  }
   0x1   :  { %s17_s17 = sshll.u32 %s167_s0, 4  ;;  %s18_s17 = int_to_ptr.hbm [resolvable:$true] %s17_s17 }
   0x2   :  { %11 = vsyncpa [#allocation6], 0  ;;  %s125_s18 = smov [#allocation3]   ;;  %s28_s22 = sshll.u32 %s168_s1, 4  ;;  %s29_s22 = int_to_ptr.hbm [resolvable:$true] %s28_s22 }
   0x3   :  { %s19_s19 = sshll.u32 %s125_s18, 4  ;;  %s126_s23 = smov [#allocation5]   ;;  %s20_s19 = int_to_ptr.vmem [resolvable:$true] %s19_s19 }
   0x4   :  { %22 = dma.hbm_to_vmem [thread:$0]  %s18_s17, 128, %s20_s19, [#allocation4]  }
   0x5   :  { %s30_s24 = sshll.u32 %s126_s23, 4  ;;  %s31_s24 = int_to_ptr.vmem [resolvable:$true] %s30_s24 }
   0x6   :  { %33 = dma.hbm_to_vmem [thread:$0]  %s29_s22, 128, %s31_s24, [#allocation6]  }
   0x7   :  { %121 = dma.done.wait [#allocation4], 128  }
   0x8   :  { %122 = vsyncadd [#allocation4], 4294967168 }
   0x9   :  { %123 = dma.done.wait [#allocation6], 128  }
   0xa   :  { %124 = vsyncadd [#allocation6], 4294967168  ;;  %v46_v0 = vld [vmem:[#allocation3] sm:$0xff]  ;;  %v48_v1 = vld [vmem:[#allocation5] sm:$0xff]  ;;  %vm56_vm0 = vcmask 261120   ;;  %v61_v11 = vstv %s170_s3  ;;  %vm63_vm1 = vcmask 7168  }
   0xb   :  { %v50_v2 = vld [vmem:[%s169_s2] sm:$0x3]  ;;  %v47_v3 = vmax.f32 %v46_v0, 0.0  ;;  %v49_v4 = vmax.f32 %v48_v1, 0.0 }
   0xc   :  { %v51_v5 = vperm.slane %v50_v2, 0  ;;  %v53_v6 = vperm.slane %v50_v2, 1 }
   0xe   :  { %v52_v7 = vmul.f32 %v51_v5, %v47_v3  ;;  %v54_v8 = vmul.f32 %v53_v6, %v49_v4 }
  0x10   :  { %v55_v9 = vadd.f32 %v54_v8, %v52_v7 }
  0x12   :  { %v57_v10 = vsel %vm56_vm0, %v55_v9, 0.0 }
  0x13   :  { %58 = vadd.xlane.f32.xlu0 %v57_v10 }
  0x86   :  { %v59_v12 = vpop.xlane.xlu0 %58 }
  0x87   :  { %v62_v13 = vadd.f32 %v61_v11, %v59_v12 }
  0x89   :  { %64 = vst.msk [vmem:[%s171_s4] sm:$0xff] %vm63_vm1, %v62_v13 }
  0x8a   :  { %69 = vsyncpa [#allocation4], 1 }
  0x8b   :  { %70 = vsyncpa [#allocation6], 1 }

</bundles_post_ra>
